<compile_context>
chip_gen: v7x
topology: tpu7x:2x2x1
jax: 0.10.0
libtpu: 0.0.40
codegen_flags: <defaults>
</compile_context>

<pallas_src>
import functools

import jax
import jax.numpy as jnp
from jax.experimental import pallas as pl
from jax.experimental.pallas import tpu as pltpu

LN_EPS = 1e-5  # torch.nn.LayerNorm default


def _round_up(n, m):
    return (n + m - 1) // m * m


def ffn_kernel(x_ref, w1_ref, b1_ref, w2_ref, b2_ref, gamma_ref, beta_ref,
               o_ref, acc_ref, *xm_scratch, d_real, mxu_dtype):
    """Grid = (row_tiles, hidden_chunks); hidden-chunk axis is the reduction."""
    hk = pl.program_id(1)
    xm_ref = xm_scratch[0] if xm_scratch else None

    @pl.when(hk == 0)
    def _():
        x = x_ref[...]
        # Fold residual + fc2 bias into the accumulator init (removes a zero
        # store and two full-tile adds from the epilogue).
        acc_ref[...] = x.astype(jnp.float32) + b2_ref[...].astype(jnp.float32)
        if xm_ref is not None:
            # Cast x for the MXU once per row tile, not once per hidden chunk.
            xm_ref[...] = x.astype(mxu_dtype)

    xv = xm_ref[...] if xm_ref is not None else x_ref[...].astype(mxu_dtype)

    # fc1 chunk + bias + ReLU (MXU in mxu_dtype, elementwise kept in f32).
    h = jnp.dot(xv, w1_ref[...], preferred_element_type=jnp.float32)
    h = jnp.maximum(h + b1_ref[...].astype(jnp.float32), 0.0)

    # fc2 chunk, accumulated into the resident f32 scratch.
    acc_ref[...] += jnp.dot(h.astype(mxu_dtype), w2_ref[...],
                            preferred_element_type=jnp.float32)

    @pl.when(hk == pl.num_programs(1) - 1)
    def _():
        z = acc_ref[...]                 # (tm, D_pad); padded lanes are exactly 0
        d_pad = z.shape[-1]
        inv_d = 1.0 / d_real
        mean = jnp.sum(z, axis=-1, keepdims=True) * inv_d
        zc = z - mean
        ssq = jnp.sum(zc * zc, axis=-1, keepdims=True)
        if d_pad != d_real:
            # Each padded lane of z is 0, so it contributes exactly mean^2 to
            # sum((z-mean)^2); remove those analytically (no iota/where mask).
            ssq = ssq - (d_pad - d_real) * (mean * mean)
        zn = zc * jax.lax.rsqrt(ssq * inv_d + LN_EPS)
        out = (zn * gamma_ref[...].astype(jnp.float32)
               + beta_ref[...].astype(jnp.float32))
        o_ref[...] = out.astype(o_ref.dtype)


def position_wise_feed_forward(x, w1, b1, w2, b2, gamma, beta, *,
                               tm=None, th=None, mxu_dtype=None,
                               vmem_budget_bytes=None):
    """x: (batch, seq, D). w1: (D, H), w2: (H, D) pre-transposed to (in, out).

    mxu_dtype: dtype fed to the MXU matmuls.  Defaults to bfloat16 when x is
    float32 (fastest on every TPU generation); accumulation and all
    elementwise / LayerNorm math stay float32.
    """
    B, S, D = x.shape
    H = w1.shape[1]
    M = B * S

    if mxu_dtype is None:
        mxu_dtype = jnp.bfloat16 if x.dtype == jnp.float32 else x.dtype
    mxu_dtype = jnp.dtype(mxu_dtype)
    xb = jnp.dtype(x.dtype).itemsize
    wb = mxu_dtype.itemsize
    use_xm = mxu_dtype != jnp.dtype(x.dtype)   # need a cast-once x scratch?

    # Per-generation VMEM budget: ~78% of physical VMEM, capped at 100 MiB
    # (-> ~100 MiB on 128 MiB v5e/v6e, ~50 MiB on 64 MiB-per-TC v7x).
    if vmem_budget_bytes is None:
        try:
            phys = pltpu.get_tpu_info().vmem_capacity_bytes
        except Exception:
            phys = 64 << 20                     # conservative fallback
        vmem_budget_bytes = min(int(phys * 0.78), 100 << 20)

    # Lane-dense padding of the feature dims (multiples of 128).
    D_pad = _round_up(D, 128)
    H_pad128 = _round_up(H, 128)

    # ---------------- Row tile ----------------
    tm_ = min(tm if tm is not None else 512, _round_up(M, 8))
    tm_ = max(8, _round_up(tm_, 8))
    M_pad = _round_up(M, tm_)
    # v7x megacore: make sure the "parallel" row axis has >= 2 tiles when
    # possible so both TensorCores get work (harmless on v5e/v6e).
    while M_pad // tm_ < 2 and tm_ > 8:
        tm_ = max(8, _round_up(tm_ // 2, 8))
        M_pad = _round_up(M, tm_)

    headroom = 4 << 20                          # compiler-internal scratch slack
    const_bytes = 3 * 8 * D_pad * 4             # b2, gamma, beta (single buffer)

    def row_tile_bytes(t):
        b = t * D_pad * (2 * xb + 2 * xb + 4)   # x dbuf + out dbuf + f32 acc
        if use_xm:
            b += t * D_pad * wb                 # mxu-dtype x scratch
        return b

    def streamed_chunk_bytes(c):
        # W1 chunk + W2 chunk (double-buffered) + b1 chunk (double-buffered).
        return 4 * D_pad * c * wb + 2 * 8 * c * 4

    resident_bytes = (2 * D_pad * H_pad128 * wb     # W1 + W2, single-buffered
                      + 8 * H_pad128 * 4)           # b1, single-buffered

    # -------- Hidden chunk: full weight residency if it fits, else stream ----
    if th is not None:
        th_ = min(_round_up(th, 128), H_pad128)
        resident = th_ >= H_pad128
    else:
        while True:
            avail = (vmem_budget_bytes - headroom - const_bytes
                     - row_tile_bytes(tm_))
            if resident_bytes <= avail:
                th_, resident = H_pad128, True
                break
            th_ = H_pad128
            while th_ > 128 and streamed_chunk_bytes(th_) > avail:
                th_ = _round_up(th_ // 2, 128)
            if streamed_chunk_bytes(th_) <= avail or tm_ <= 8:
                resident = False
                break
            # Not even one 128-wide chunk fits: shrink the row tile and retry.
            tm_ = max(8, _round_up(tm_ // 2, 8))
            M_pad = _round_up(M, tm_)

    H_pad = _round_up(H, th_)
    grid = (M_pad // tm_, H_pad // th_)

    # ---------------- Pad / cast operands ----------------
    def pad2(a, r, c):
        return jnp.pad(a, ((0, r - a.shape[0]), (0, c - a.shape[1])))

    x2 = pad2(x.reshape(M, D), M_pad, D_pad)
    w1p = pad2(w1, D_pad, H_pad).astype(mxu_dtype)
    w2p = pad2(w2, H_pad, D_pad).astype(mxu_dtype)
    b1p = pad2(b1.reshape(1, H), 1, H_pad).astype(jnp.float32)
    b2p = pad2(b2.reshape(1, D), 1, D_pad).astype(jnp.float32)
    gp = pad2(gamma.reshape(1, D), 1, D_pad).astype(jnp.float32)
    bp = pad2(beta.reshape(1, D), 1, D_pad).astype(jnp.float32)

    # ---------------- BlockSpecs ----------------
    single = pl.Buffered(1)   # grid-constant blocks need no double buffer
    if resident:
        w1_spec = pl.BlockSpec((D_pad, H_pad), lambda i, hk: (0, 0),
                               pipeline_mode=single)
        b1_spec = pl.BlockSpec((1, H_pad), lambda i, hk: (0, 0),
                               pipeline_mode=single)
        w2_spec = pl.BlockSpec((H_pad, D_pad), lambda i, hk: (0, 0),
                               pipeline_mode=single)
    else:
        w1_spec = pl.BlockSpec((D_pad, th_), lambda i, hk: (0, hk))
        b1_spec = pl.BlockSpec((1, th_), lambda i, hk: (0, hk))
        w2_spec = pl.BlockSpec((th_, D_pad), lambda i, hk: (hk, 0))

    def _const_spec():
        return pl.BlockSpec((1, D_pad), lambda i, hk: (0, 0),
                            pipeline_mode=single)

    scratch = [pltpu.VMEM((tm_, D_pad), jnp.float32)]        # f32 accumulator
    if use_xm:
        scratch.append(pltpu.VMEM((tm_, D_pad), mxu_dtype))  # cast-once x

    kernel = functools.partial(ffn_kernel, d_real=D, mxu_dtype=mxu_dtype)

    out2 = pl.pallas_call(
        kernel,
        out_shape=jax.ShapeDtypeStruct((M_pad, D_pad), x.dtype),
        grid_spec=pltpu.PrefetchScalarGridSpec(
            num_scalar_prefetch=0,
            grid=grid,
            in_specs=[
                pl.BlockSpec((tm_, D_pad), lambda i, hk: (i, 0)),   # x rows
                w1_spec,                                            # W1
                b1_spec,                                            # b1
                w2_spec,                                            # W2
                _const_spec(),                                      # b2
                _const_spec(),                                      # LN weight
                _const_spec(),                                      # LN bias
            ],
            out_specs=pl.BlockSpec((tm_, D_pad), lambda i, hk: (i, 0)),
            scratch_shapes=scratch,
        ),
        compiler_params=pltpu.CompilerParams(
            # Row axis "parallel" (megacore sharding on v7x); hidden axis is
            # the in-VMEM reduction -> "arbitrary", last in the grid.
            dimension_semantics=("parallel", "arbitrary"),
            vmem_limit_bytes=int(vmem_budget_bytes),
        ),
    )(x2, w1p, b1p, w2p, b2p, gp, bp)

    return out2[:M, :D].reshape(B, S, D)


def reference_ffn(x, w1, b1, w2, b2, gamma, beta):
    h = jnp.maximum(x @ w1 + b1, 0.0)
    y = h @ w2 + b2
    z = y + x
    mean = jnp.mean(z, axis=-1, keepdims=True)
    var = jnp.mean((z - mean) ** 2, axis=-1, keepdims=True)
    return (z - mean) * jax.lax.rsqrt(var + LN_EPS) * gamma + beta


if __name__ == "__main__":
    # Small deterministic setup: batch=2, seq=8, dim_model=32, hidden=64
    B, S, D, H = 2, 8, 32, 64
    key = jax.random.PRNGKey(0)
    kx, k1, kb1, k2, kb2 = jax.random.split(key, 5)

    x = jax.random.normal(kx, (B, S, D), dtype=jnp.float32)
    w1 = jax.random.normal(k1, (D, H), dtype=jnp.float32) * (1.0 / jnp.sqrt(D))
    b1 = jax.random.normal(kb1, (H,), dtype=jnp.float32) * 0.01
    w2 = jax.random.normal(k2, (H, D), dtype=jnp.float32) * (1.0 / jnp.sqrt(H))
    b2 = jax.random.normal(kb2, (D,), dtype=jnp.float32) * 0.01
    gamma = jnp.ones((D,), dtype=jnp.float32)   # nn.LayerNorm default weight
    beta = jnp.zeros((D,), dtype=jnp.float32)   # nn.LayerNorm default bias

    ref = reference_ffn(x, w1, b1, w2, b2, gamma, beta)

    # 1) Exact-parity check: forced f32 MXU path, resident weights.
    out_f32 = jax.block_until_ready(position_wise_feed_forward(
        x, w1, b1, w2, b2, gamma, beta, mxu_dtype=jnp.float32))
    assert out_f32.shape == (B, S, D)
    assert jnp.allclose(out_f32, ref, atol=1e-4, rtol=1e-4), float(
        jnp.max(jnp.abs(out_f32 - ref)))

    # 2) Default fast path: bf16 MXU, f32 accumulation / elementwise.
    out_bf16 = jax.block_until_ready(position_wise_feed_forward(
        x, w1, b1, w2, b2, gamma, beta))
    assert jnp.allclose(out_bf16, ref, atol=1e-1, rtol=5e-2), float(
        jnp.max(jnp.abs(out_bf16 - ref)))

    # 3) Forced hidden-chunk streaming (th < H_pad) to exercise the
    #    accumulate-over-chunks path.
    H2 = 256
    k3, kb3, k4, kb4 = jax.random.split(jax.random.PRNGKey(1), 4)
    w1b = jax.random.normal(k3, (D, H2), dtype=jnp.float32) * (1.0 / jnp.sqrt(D))
    b1b = jax.random.normal(kb3, (H2,), dtype=jnp.float32) * 0.01
    w2b = jax.random.normal(k4, (H2, D), dtype=jnp.float32) * (1.0 / jnp.sqrt(H2))
    b2b = jax.random.normal(kb4, (D,), dtype=jnp.float32) * 0.01
    ref2 = reference_ffn(x, w1b, b1b, w2b, b2b, gamma, beta)

    out_s32 = jax.block_until_ready(position_wise_feed_forward(
        x, w1b, b1b, w2b, b2b, gamma, beta, th=128, mxu_dtype=jnp.float32))
    assert jnp.allclose(out_s32, ref2, atol=1e-4, rtol=1e-4), float(
        jnp.max(jnp.abs(out_s32 - ref2)))

    out_sbf = jax.block_until_ready(position_wise_feed_forward(
        x, w1b, b1b, w2b, b2b, gamma, beta, th=128))     # bf16 + xm scratch reuse
    assert jnp.allclose(out_sbf, ref2, atol=1e-1, rtol=5e-2), float(
        jnp.max(jnp.abs(out_sbf - ref2)))

    print("KERNEL_OK")
</pallas_src>

<mosaic_0001>
module attributes {stable_mosaic.version = 11 : i64} {
  func.func @ffn_kernel(%arg0: i32, %arg1: i32, %arg2: memref<8x128xf32, #tpu.memory_space<vmem>>, %arg3: memref<128x128xf32, #tpu.memory_space<vmem>>, %arg4: memref<1x128xf32, #tpu.memory_space<vmem>>, %arg5: memref<128x128xf32, #tpu.memory_space<vmem>>, %arg6: memref<1x128xf32, #tpu.memory_space<vmem>>, %arg7: memref<1x128xf32, #tpu.memory_space<vmem>>, %arg8: memref<1x128xf32, #tpu.memory_space<vmem>>, %arg9: memref<8x128xf32, #tpu.memory_space<vmem>>, %arg10: memref<8x128xf32, #tpu.memory_space<vmem>>) attributes {dimension_semantics = [#tpu.dimension_semantics<parallel>, #tpu.dimension_semantics<arbitrary>], iteration_bounds = array<i64: 2, 1>, scalar_prefetch = 0 : i64, scratch_operands = 1 : i64, tpu.core_type = #tpu.core_type<tc>, window_params = [{transform_indices = @transform_0, window_bounds = array<i64: 8, 128>}, {pipeline_mode = #tpu.pipeline_mode<synchronous>, transform_indices = @transform_1, window_bounds = array<i64: 128, 128>}, {pipeline_mode = #tpu.pipeline_mode<synchronous>, transform_indices = @transform_2, window_bounds = array<i64: 1, 128>}, {pipeline_mode = #tpu.pipeline_mode<synchronous>, transform_indices = @transform_3, window_bounds = array<i64: 128, 128>}, {pipeline_mode = #tpu.pipeline_mode<synchronous>, transform_indices = @transform_4, window_bounds = array<i64: 1, 128>}, {pipeline_mode = #tpu.pipeline_mode<synchronous>, transform_indices = @transform_5, window_bounds = array<i64: 1, 128>}, {pipeline_mode = #tpu.pipeline_mode<synchronous>, transform_indices = @transform_6, window_bounds = array<i64: 1, 128>}, {transform_indices = @transform_7, window_bounds = array<i64: 8, 128>}]} {
    %c0_i32 = arith.constant 0 : i32
    %0 = arith.cmpi eq, %arg1, %c0_i32 : i32
    %1 = arith.extui %0 : i1 to i32
    %c0_i32_0 = arith.constant 0 : i32
    %2 = arith.cmpi ne, %1, %c0_i32_0 : i32
    scf.if %2 {
      %c0_16 = arith.constant 0 : index
      %c0_17 = arith.constant 0 : index
      %19 = vector.load %arg2[%c0_16, %c0_17] : memref<8x128xf32, #tpu.memory_space<vmem>>, vector<8x128xf32>
      %c0_18 = arith.constant 0 : index
      %c0_19 = arith.constant 0 : index
      %20 = vector.load %arg6[%c0_18, %c0_19] : memref<1x128xf32, #tpu.memory_space<vmem>>, vector<1x128xf32>
      %21 = vector.broadcast %20 : vector<1x128xf32> to vector<8x128xf32>
      %22 = arith.addf %19, %21 : vector<8x128xf32>
      %c0_20 = arith.constant 0 : index
      %c0_21 = arith.constant 0 : index
      %23 = vector.load %arg10[%c0_20, %c0_21] : memref<8x128xf32, #tpu.memory_space<vmem>>, vector<8x128xf32>
      tpu.vector_store %arg10[%c0_20, %c0_21], %22 {strides = array<i32>} : memref<8x128xf32, #tpu.memory_space<vmem>>, vector<8x128xf32>,
    } else {
    }
    %c0 = arith.constant 0 : index
    %c0_1 = arith.constant 0 : index
    %3 = vector.load %arg2[%c0, %c0_1] : memref<8x128xf32, #tpu.memory_space<vmem>>, vector<8x128xf32>
    %c0_2 = arith.constant 0 : index
    %c0_3 = arith.constant 0 : index
    %4 = vector.load %arg3[%c0_2, %c0_3] : memref<128x128xf32, #tpu.memory_space<vmem>>, vector<128x128xf32>
    %cst = arith.constant dense<0.000000e+00> : vector<8x128xf32>
    %5 = tpu.matmul %3, %4, %cst {dimension_numbers = #tpu.dot_dimension_numbers<[1], [0], [0], [1], [0, 0, 1, 1], [], []>} : vector<8x128xf32>, vector<128x128xf32>, vector<8x128xf32> -> vector<8x128xf32>
    %c0_4 = arith.constant 0 : index
    %c0_5 = arith.constant 0 : index
    %6 = vector.load %arg4[%c0_4, %c0_5] : memref<1x128xf32, #tpu.memory_space<vmem>>, vector<1x128xf32>
    %7 = vector.broadcast %6 : vector<1x128xf32> to vector<8x128xf32>
    %8 = arith.addf %5, %7 : vector<8x128xf32>
    %cst_6 = arith.constant 0.000000e+00 : f32
    %9 = vector.broadcast %cst_6 : f32 to vector<8x128xf32>
    %10 = arith.maximumf %8, %9 : vector<8x128xf32>
    %c0_7 = arith.constant 0 : index
    %c0_8 = arith.constant 0 : index
    %11 = vector.load %arg10[%c0_7, %c0_8] : memref<8x128xf32, #tpu.memory_space<vmem>>, vector<8x128xf32>
    %c0_9 = arith.constant 0 : index
    %c0_10 = arith.constant 0 : index
    %12 = vector.load %arg5[%c0_9, %c0_10] : memref<128x128xf32, #tpu.memory_space<vmem>>, vector<128x128xf32>
    %cst_11 = arith.constant dense<0.000000e+00> : vector<8x128xf32>
    %13 = tpu.matmul %10, %12, %cst_11 {dimension_numbers = #tpu.dot_dimension_numbers<[1], [0], [0], [1], [0, 0, 1, 1], [], []>} : vector<8x128xf32>, vector<128x128xf32>, vector<8x128xf32> -> vector<8x128xf32>
    %14 = arith.addf %11, %13 : vector<8x128xf32>
    %c0_12 = arith.constant 0 : index
    %c0_13 = arith.constant 0 : index
    %15 = vector.load %arg10[%c0_12, %c0_13] : memref<8x128xf32, #tpu.memory_space<vmem>>, vector<8x128xf32>
    tpu.vector_store %arg10[%c0_12, %c0_13], %14 {strides = array<i32>} : memref<8x128xf32, #tpu.memory_space<vmem>>, vector<8x128xf32>,
    %c0_i32_14 = arith.constant 0 : i32
    %16 = arith.cmpi eq, %arg1, %c0_i32_14 : i32
    %17 = arith.extui %16 : i1 to i32
    %c0_i32_15 = arith.constant 0 : i32
    %18 = arith.cmpi ne, %17, %c0_i32_15 : i32
    scf.if %18 {
      %c0_16 = arith.constant 0 : index
      %c0_17 = arith.constant 0 : index
      %19 = vector.load %arg10[%c0_16, %c0_17] : memref<8x128xf32, #tpu.memory_space<vmem>>, vector<8x128xf32>
      %cst_18 = arith.constant dense<0.000000e+00> : vector<8xf32>
      %20 = vector.multi_reduction <add>, %19, %cst_18 [1] : vector<8x128xf32> to vector<8xf32>
      %21 = vector.shape_cast %20 : vector<8xf32> to vector<8x1xf32>
      %cst_19 = arith.constant 3.125000e-02 : f32
      %22 = vector.broadcast %cst_19 : f32 to vector<8x1xf32>
      %23 = arith.mulf %21, %22 : vector<8x1xf32>
      %24 = vector.broadcast %23 : vector<8x1xf32> to vector<8x128xf32>
      %25 = arith.subf %19, %24 : vector<8x128xf32>
      %26 = arith.mulf %25, %25 : vector<8x128xf32>
      %cst_20 = arith.constant dense<0.000000e+00> : vector<8xf32>
      %27 = vector.multi_reduction <add>, %26, %cst_20 [1] : vector<8x128xf32> to vector<8xf32>
      %28 = vector.shape_cast %27 : vector<8xf32> to vector<8x1xf32>
      %29 = arith.mulf %23, %23 : vector<8x1xf32>
      %cst_21 = arith.constant 9.600000e+01 : f32
      %30 = vector.broadcast %cst_21 : f32 to vector<8x1xf32>
      %31 = arith.mulf %30, %29 : vector<8x1xf32>
      %32 = arith.subf %28, %31 : vector<8x1xf32>
      %cst_22 = arith.constant 3.125000e-02 : f32
      %33 = vector.broadcast %cst_22 : f32 to vector<8x1xf32>
      %34 = arith.mulf %32, %33 : vector<8x1xf32>
      %cst_23 = arith.constant 9.99999974E-6 : f32
      %35 = vector.broadcast %cst_23 : f32 to vector<8x1xf32>
      %36 = arith.addf %34, %35 : vector<8x1xf32>
      %37 = math.rsqrt %36 : vector<8x1xf32>
      %38 = vector.broadcast %37 : vector<8x1xf32> to vector<8x128xf32>
      %39 = arith.mulf %25, %38 : vector<8x128xf32>
      %c0_24 = arith.constant 0 : index
      %c0_25 = arith.constant 0 : index
      %40 = vector.load %arg7[%c0_24, %c0_25] : memref<1x128xf32, #tpu.memory_space<vmem>>, vector<1x128xf32>
      %41 = vector.broadcast %40 : vector<1x128xf32> to vector<8x128xf32>
      %42 = arith.mulf %39, %41 : vector<8x128xf32>
      %c0_26 = arith.constant 0 : index
      %c0_27 = arith.constant 0 : index
      %43 = vector.load %arg8[%c0_26, %c0_27] : memref<1x128xf32, #tpu.memory_space<vmem>>, vector<1x128xf32>
      %44 = vector.broadcast %43 : vector<1x128xf32> to vector<8x128xf32>
      %45 = arith.addf %42, %44 : vector<8x128xf32>
      %c0_28 = arith.constant 0 : index
      %c0_29 = arith.constant 0 : index
      %46 = vector.load %arg9[%c0_28, %c0_29] : memref<8x128xf32, #tpu.memory_space<vmem>>, vector<8x128xf32>
      tpu.vector_store %arg9[%c0_28, %c0_29], %45 {strides = array<i32>} : memref<8x128xf32, #tpu.memory_space<vmem>>, vector<8x128xf32>,
    } else {
    }
    return
  }
  func.func @transform_0(%arg0: i32, %arg1: i32) -> (i32, i32) {
    %c0_i32 = arith.constant 0 : i32
    %c0_i32_0 = arith.constant 0 : i32
    return %arg0, %c0_i32 : i32, i32
  }
  func.func @transform_1(%arg0: i32, %arg1: i32) -> (i32, i32) {
    %c0_i32 = arith.constant 0 : i32
    %c0_i32_0 = arith.constant 0 : i32
    %c0_i32_1 = arith.constant 0 : i32
    return %c0_i32, %c0_i32_0 : i32, i32
  }
  func.func @transform_2(%arg0: i32, %arg1: i32) -> (i32, i32) {
    %c0_i32 = arith.constant 0 : i32
    %c0_i32_0 = arith.constant 0 : i32
    %c0_i32_1 = arith.constant 0 : i32
    return %c0_i32, %c0_i32_0 : i32, i32
  }
  func.func @transform_3(%arg0: i32, %arg1: i32) -> (i32, i32) {
    %c0_i32 = arith.constant 0 : i32
    %c0_i32_0 = arith.constant 0 : i32
    %c0_i32_1 = arith.constant 0 : i32
    return %c0_i32, %c0_i32_0 : i32, i32
  }
  func.func @transform_4(%arg0: i32, %arg1: i32) -> (i32, i32) {
    %c0_i32 = arith.constant 0 : i32
    %c0_i32_0 = arith.constant 0 : i32
    %c0_i32_1 = arith.constant 0 : i32
    return %c0_i32, %c0_i32_0 : i32, i32
  }
  func.func @transform_5(%arg0: i32, %arg1: i32) -> (i32, i32) {
    %c0_i32 = arith.constant 0 : i32
    %c0_i32_0 = arith.constant 0 : i32
    %c0_i32_1 = arith.constant 0 : i32
    return %c0_i32, %c0_i32_0 : i32, i32
  }
  func.func @transform_6(%arg0: i32, %arg1: i32) -> (i32, i32) {
    %c0_i32 = arith.constant 0 : i32
    %c0_i32_0 = arith.constant 0 : i32
    %c0_i32_1 = arith.constant 0 : i32
    return %c0_i32, %c0_i32_0 : i32, i32
  }
  func.func @transform_7(%arg0: i32, %arg1: i32) -> (i32, i32) {
    %c0_i32 = arith.constant 0 : i32
    %c0_i32_0 = arith.constant 0 : i32
    return %arg0, %c0_i32 : i32, i32
  }
}

</mosaic_0001>

<bundles_post_ra>
// kernel: tpu_custom_call.1
= control target key start
LH: loop header
LB: loop body
LE: loop exit
PB: predicated region body
PF: predicated region fallthrough
CT: control target
= control target key end

     0   :  { %12 = vsyncpa [#allocation4], 0  ;;  %s1450_s0 = inlined_call_operand.hbm [shape: f32[16,128], index: 0, kind: input, shape index: {}]   ;;  %s1451_s1 = inlined_call_operand.hbm [shape: f32[128,128], index: 1, kind: input, shape index: {}]   ;;  %s1452_s2 = inlined_call_operand.vmem [shape: f32[1,128], index: 2, kind: input, shape index: {}]   ;;  %s1453_s3 = inlined_call_operand.hbm [shape: f32[128,128], index: 3, kind: input, shape index: {}]   ;;  %s1454_s4 = inlined_call_operand.vmem [shape: f32[1,128], index: 4, kind: input, shape index: {}]   ;;  %s1455_s5 = inlined_call_operand.vmem [shape: f32[1,128], index: 5, kind: input, shape index: {}]   ;;  %s1456_s6 = inlined_call_operand.vmem [shape: f32[1,128], index: 6, kind: input, shape index: {}]   ;;  %s1457_s7 = inlined_call_operand.hbm [shape: f32[16,128], index: 7, kind: output, shape index: {}]  }
   0x1   :  { %14 = vsyncpa [#allocation4 + $0x1], 0 }
   0x2   :  { %15 = vsyncpa [#allocation7], 0 }
   0x3   :  { %16 = vsyncpa [#allocation5], 0 }
   0x4   :  { %18 = vsyncpa [#allocation5 + $0x1], 0  ;;  %s1165_s24 = smov 0   ;;  %s1167_s25 = smov 0  }
   0x5   :  { %s1169_s26 = smov 0   ;;  %s1171_s27 = smov 0  }
   0x6   :  { %s1173_s28 = smov 0   ;;  %s1175_s29 = smov 0  }
   0x7 LB: > { %1464 = sst [smem:[#allocation13_spill]] %s1094_s24  ;;  %s679_s30 = sadd.s32 4294967295, %s1114_s29   ;;  %s1114_s29 = sphi %s1175_s29, %s24_s29   ;;  %s1110_s28 = sphi %s1173_s28, %s1485_s28   ;;  %s1106_s27 = sphi %s1171_s27, %s1484_s27   ;;  %s1102_s26 = sphi %s1169_s26, %s1483_s26   ;;  %s1098_s25 = sphi %s1167_s25, %s1482_s25   ;;  %s1094_s24 = sphi %s1165_s24, %s1481_s24  }
   0x8   : > { %s680_s8 = sadd.s32 4294967294, %s1114_s29   ;;  %p56_p0 = scmp.ne.s32.totalorder %s1098_s25, %s1094_s24 }
   0x9   : > { %p1199_p1 = scmp.eq.s32.totalorder %s679_s30, 0  ;;  %p1203_p2 = scmp.eq.s32.totalorder %s679_s30, 1 }
   0xa   : > { %p212_p3 = scmp.eq.s32.totalorder %s680_s8, 1  ;;  %p681_p5 = scmp.ge.s32.totalorder %s1114_s29, 1 }
   0xb   : > { %s1465_s9 = scalar_select %p1199_p1, 1, 0 }
   0xc   : > { %p1209_p4 = por %p1199_p1, %p56_p0  ;;  %p1214_p6 = por %p212_p3, %p56_p0 }
   0xd   : > { %p219_p7 = scmp.lt.s32.totalorder %s1114_s29, 3  ;;  %s1116_s14 = smov [#allocation6]  }
   0xe   : > { %s1467_s11 = scalar_select %p1209_p4, 1, 0 }
   0xf   : > { %s1468_s12 = scalar_select %p1214_p6, 1, 0 }
  0x10   : > { %p1219_p8 = pnand %p681_p5, %p219_p7  ;;  %s231_s15 = sshll.u32 %s1116_s14, 4  ;;  %s1223_s15 = int_to_ptr.vmem [resolvable:$true] %s231_s15 }
  0x11   : > { %1469 = sst [smem:[#allocation14_spill]] %s1468_s12  ;;  %s1117_s17 = smov [#allocation8]  }
  0x12   : > { %p864_p9 = pneg %p1219_p8  ;;  %s247_s18 = sshll.u32 %s1117_s17, 4  ;;  %s1234_s18 = int_to_ptr.vmem [resolvable:$true] %s247_s18 }
  0x13   : > { %s942_s21 = scalar_lea.hbm %s1451_s1, 2048 }
  0x14   : > { %p1230_p11 = pnand %p864_p9, %p1199_p1  ;;  %p943_p12 = scmp.ne.s32.totalorder %s1451_s1, %s942_s21 }
  0x15   : > { %p949_p5 = scmp.lt.u32.totalorder %s942_s21, %s1451_s1 }
  0x16   : > { %p944_p13 = pneg %p1230_p11 }
  0x18   : > { %p945_p0 = pnand %p944_p13, %p943_p12 }
  0x1a   : > { %p946_p3 = pneg %p945_p0 }
  0x1c   : > { %p951_p7 = pnand %p949_p5, %p946_p3 }
  0x1e   : > { %954 = shalt.err (!%p951_p7)
}
  0x1f   : > { %s955_s14 = scalar_lea.vmem %s1223_s15, 2048  ;;  %p963_p1 = scmp.lt.s32.totalorder %s1223_s15, %s1223_s15 }
  0x20   : > { %p956_p9 = scmp.ne.s32.totalorder %s1223_s15, %s955_s14  ;;  %p964_p12 = scmp.lt.s32.totalorder %s955_s14, %s955_s14 }
  0x22   : > { %p958_p10 = pnand %p956_p9, %p944_p13  ;;  %p965_p0 = por %p964_p12, %p963_p1 }
  0x24   : > { %p959_p6 = pneg %p958_p10 }
  0x26   : > { %p966_p4 = pnand %p965_p0, %p959_p6 }
  0x28   : > { %969 = shalt.err (!%p966_p4)
}
  0x29   : > { %s1118_s17 = smov 128   ;;  %s1119_s19 = smov 8  }
  0x2a   : > { %867 = dma.hbm_to_vmem [thread:$0]  (!%p1230_p11), %s1451_s1, 2048, %s1223_s15, [#allocation7], %s1118_s17, %s1118_s17, %s1119_s19  }
  0x2b   : > { %s970_s30 = scalar_lea.hbm %s1453_s3, 2048 }
  0x2c   : > { %p971_p1 = scmp.ne.s32.totalorder %s1453_s3, %s970_s30  ;;  %p977_p10 = scmp.lt.u32.totalorder %s970_s30, %s1453_s3 }
  0x2e   : > { %p973_p4 = pnand %p971_p1, %p944_p13 }
  0x30   : > { %p974_p6 = pneg %p973_p4 }
  0x32   : > { %p979_p3 = pnand %p977_p10, %p974_p6 }
  0x34   : > { %982 = shalt.err (!%p979_p3)
}
  0x35   : > { %s983_s15 = scalar_lea.vmem %s1234_s18, 2048  ;;  %p991_p12 = scmp.lt.s32.totalorder %s1234_s18, %s1234_s18 }
  0x36   : > { %p984_p5 = scmp.ne.s32.totalorder %s1234_s18, %s983_s15  ;;  %p992_p0 = scmp.lt.s32.totalorder %s983_s15, %s983_s15 }
  0x38   : > { %p986_p7 = pnand %p984_p5, %p944_p13  ;;  %p993_p1 = por %p992_p0, %p991_p12 }
  0x3a   : > { %p987_p9 = pneg %p986_p7 }
  0x3c   : > { %p994_p4 = pnand %p993_p1, %p987_p9 }
  0x3e   : > { %997 = shalt.err (!%p994_p4)
}
  0x3f   : > { %870 = dma.hbm_to_vmem [thread:$0]  (!%p1230_p11), %s1453_s3, 2048, %s1234_s18, [#allocation7], %s1118_s17, %s1118_s17, %s1119_s19  }
  0x40   : > { %s36_s20 = sadd.s32 1, %s1110_s28  ;;  %s43_s21 = sadd.s32 1, %s1102_s26 }
  0x41   : > { %p38_p13 = scmp.ge.s32.totalorder %s36_s20, 2  ;;  %p50_p6 = scmp.ne.s32.totalorder %s1102_s26, %s1098_s25 }
  0x42   : > { %p51_p10 = scmp.eq.s32.totalorder %s1114_s29, 0  ;;  %p881_p3 = scmp.lt.s32.totalorder %s1114_s29, 2 }
  0x43   : > { %s1487_s20 = smov (%p38_p13, %s36_s20), 0  ;;  %p1298_p7 = por %p1203_p2, %p50_p6 }
  0x44   : > { %p52_p5 = por %p51_p10, %p50_p6  ;;  %s40_s22 = ssub.s32 %s1110_s28, %s1487_s20 }
  0x45   : > { %s1472_s16 = scalar_select %p1298_p7, 1, 0 }
  0x46   : > { %s270_s23 = sand.u32 1, %s1102_s26   ;;  %p41_p9 = scmp.eq.s32.totalorder %s40_s22, 0 }
  0x47   : > { %s685_s18 = sshll.u32 %s270_s23, 3  ;;  %s686_s17 = sshll.u32 %s1110_s28, 7 }
  0x48   : > { %s1307_s19 = scalar_select %p41_p9, %s1102_s26, %s43_s21  }
  0x49   : > { %s1312_s14 = scalar_lea.hbm %s1450_s0, %s686_s17  ;;  %s274_s10 = scalar_lea.vmem [#allocation3], %s685_s18 }
  0x4a   : > { %s281_s15 = sshll.u32 %s274_s10, 4  ;;  %p1316_p2 = pnand %p881_p3, %p52_p5  ;;  %s1320_s15 = int_to_ptr.vmem [resolvable:$true] %s281_s15 }
  0x4b   : > { %s271_s12 = scalar_lea.sflag [#allocation4], %s270_s23  ;;  %s998_s21 = scalar_lea.hbm %s1312_s14, 128 }
  0x4c   : > { %p999_p11 = scmp.ne.s32.totalorder %s1312_s14, %s998_s21  ;;  %p1000_p12 = pneg %p1316_p2 }
  0x4d   : > { %s1003_s17 = scalar_lea.hbm %s1450_s0, 256  ;;  %p1004_p4 = scmp.lt.u32.totalorder %s1312_s14, %s1450_s0 }
  0x4e   : > { %p1001_p0 = pnand %p1000_p12, %p999_p11  ;;  %p1005_p13 = scmp.lt.u32.totalorder %s1003_s17, %s998_s21 }
  0x4f   : > { %p1007_p10 = scmp.lt.u32.totalorder %s998_s21, %s1312_s14 }
  0x50   : > { %p1002_p1 = pneg %p1001_p0  ;;  %p1006_p6 = por %p1005_p13, %p1004_p4 }
  0x52   : > { %p1008_p3 = por %p1007_p10, %p1006_p6 }
  0x54   : > { %p1009_p5 = pnand %p1008_p3, %p1002_p1 }
  0x56   : > { %1012 = shalt.err (!%p1009_p5)
}
  0x57   : > { %s1013_s23 = scalar_lea.vmem %s1320_s15, 128  ;;  %s1120_s10 = smov [#allocation3]  }
  0x58   : > { %p1014_p9 = scmp.ne.s32.totalorder %s1320_s15, %s1013_s23  ;;  %s1018_s22 = sshll.u32 %s1120_s10, 4  ;;  %s1019_s22 = int_to_ptr.vmem [resolvable:$false] %s1018_s22 }
  0x59   : > { %s1020_s18 = scalar_lea.vmem %s1019_s22, 256  ;;  %p1021_p7 = scmp.lt.s32.totalorder %s1320_s15, %s1019_s22 }
  0x5a   : > { %p1016_p11 = pnand %p1014_p9, %p1000_p12  ;;  %p1022_p4 = scmp.lt.s32.totalorder %s1020_s18, %s1013_s23 }
  0x5c   : > { %p1017_p0 = pneg %p1016_p11  ;;  %p1023_p13 = por %p1022_p4, %p1021_p7 }
  0x5e   : > { %p1024_p6 = pnand %p1023_p13, %p1017_p0 }
  0x60   : > { %1027 = shalt.err (!%p1024_p6)
}
  0x61   : > { %874 = dma.hbm_to_vmem [thread:$0]  (!%p1316_p2), %s1312_s14, 128, %s1320_s15, %s271_s12  }
  0x62   : > { %290 = sbr.rel (%p1219_p8) target bundleno = 901 (0x385), region = 48  ;;  %s1350_s21 = sand.u32 (!%p1219_p8), 1, %s1098_s25  }
  0x63   : > { %s688_s17 = sshll.u32 (!%p1219_p8), %s1350_s21, 3  ;;  %s293_s30 = scalar_lea.sflag (!%p1219_p8), [#allocation4], %s1350_s21 }
  0x64   : > { %s1356_s8 = scalar_lea.vmem (!%p1219_p8), [#allocation3], %s688_s17  ;;  %p1474_p7 = scmp.ne.s32.totalorder (!%p1219_p8), %s1467_s11, 0 }
  0x69   : > { %1081 = dma.done.wait (%p1474_p7), %s293_s30, 128  }
  0x6a   : > { %1083 = vsyncadd (%p1474_p7), %s293_s30, 4294967168  ;;  %p1475_p2 = scmp.ne.s32.totalorder %s1465_s9, 0 }
  0x6c   : > { %1085 = dma.done.wait (%p1475_p2), [#allocation7], 4096  }
  0x6d   : > { %1087 = vsyncadd (%p1475_p2), [#allocation7], 4294963200  ;;  %v1121_v0 = vmov 0.0|0.0   ;;  %vm1122_vm0 = vmmov 0   ;;  %v1123_v1 = vmov 0.0   ;;  %v350_v2 = vld [vmem:[#allocation6] sm:$0xff] }
  0x6e   : > { %804 = vmatprep.subr.bf16.mxu0 %v1121_v0  ;;  %766 = vmatprep.mubr.msk.f32.mxu0 %vm1122_vm0, %v1123_v1  ;;  %v351_v3 = vld [vmem:[#allocation6 + $0x8] sm:$0xff]  ;;  %v352_v4 = vld [vmem:[#allocation6 + $0x10] sm:$0xff]  ;;  %v353_v6 = vld [vmem:[#allocation6 + $0x18] sm:$0xff]  ;;  %s697_s10 = sshll.u32 %s1106_s27, 7  ;;  %s334_s22 = scalar_lea.vmem [#allocation9], %s688_s17 }
  0x6f   : > { %828 = vmatprep.subr.bf16.mxu1 %v1121_v0  ;;  %801 = vmatprep.mubr.msk.f32.mxu1 %vm1122_vm0, %v1123_v1  ;;  %v805_v5 = vpack.c.bf16 %v351_v3, %v350_v2  ;;  %v808_v7 = vpack.c.bf16 %v353_v6, %v352_v4  ;;  %v354_v8 = vld [vmem:[#allocation6 + $0x20] sm:$0xff]  ;;  %v355_v9 = vld [vmem:[#allocation6 + $0x28] sm:$0xff]  ;;  %v447_v12 = vld [vmem:[#allocation8 + $0x10] sm:$0xff]  ;;  %s582_s18 = sshll.u32 %s334_s22, 4  ;;  %s1401_s9 = scalar_lea.hbm %s1457_s7, %s697_s10  ;;  %s1403_s18 = int_to_ptr.vmem [resolvable:$true] %s582_s18 }
  0x70   : > { %v445_v10 = vld [vmem:[#allocation8] sm:$0xff]  ;;  %v446_v11 = vld [vmem:[#allocation8 + $0x8] sm:$0xff]  ;;  %v448_v13 = vld [vmem:[#allocation8 + $0x18] sm:$0xff]  ;;  %v811_v14 = vpack.c.bf16 %v355_v9, %v354_v8  ;;  %s569_s11 = scalar_lea.sflag [#allocation5], %s1350_s21  ;;  %s1028_s13 = scalar_lea.vmem %s1403_s18, 128 }
  0x71   : > { %806 = vmatpush3.bf16.msra.mxu0 %v805_v5  ;;  %v829_v15 = vpack.c.bf16 %v446_v11, %v445_v10  ;;  %v356_v16 = vld [vmem:[#allocation6 + $0x30] sm:$0xff]  ;;  %v357_v17 = vld [vmem:[#allocation6 + $0x38] sm:$0xff]  ;;  %v832_v18 = vpack.c.bf16 %v448_v13, %v447_v12  ;;  %v449_v19 = vld [vmem:[#allocation8 + $0x20] sm:$0xff]  ;;  %p1029_p8 = scmp.ne.s32.totalorder %s1403_s18, %s1028_s13  ;;  %p1476_p12 = scmp.ne.s32.totalorder %s1472_s16, 0 }
  0x72   : > { %807 = vmatprep.subr.bf16.mxu0 %v1121_v0  ;;  %v450_v20 = vld [vmem:[#allocation8 + $0x28] sm:$0xff]  ;;  %v814_v21 = vpack.c.bf16 %v357_v17, %v356_v16  ;;  %v358_v22 = vld [vmem:[#allocation6 + $0x40] sm:$0xff]  ;;  %v451_v25 = vld [vmem:[#allocation8 + $0x30] sm:$0xff]  ;;  %s1124_s27 = smov [#allocation9]  }
  0x73   : > { %830 = vmatpush3.bf16.msra.mxu1 %v829_v15  ;;  %v359_v23 = vld [vmem:[#allocation6 + $0x48] sm:$0xff]  ;;  %v835_v24 = vpack.c.bf16 %v450_v20, %v449_v19  ;;  %v452_v26 = vld [vmem:[#allocation8 + $0x38] sm:$0xff]  ;;  %v360_v28 = vld [vmem:[#allocation6 + $0x50] sm:$0xff]  ;;  %p1030_p1 = pnand %p1029_p8, %p1476_p12  ;;  %s1032_s17 = sshll.u32 %s1124_s27, 4  ;;  %s1033_s17 = int_to_ptr.vmem [resolvable:$false] %s1032_s17 }
  0x74   : > { %831 = vmatprep.subr.bf16.mxu1 %v1121_v0  ;;  %v817_v27 = vpack.c.bf16 %v359_v23, %v358_v22  ;;  %v361_v29 = vld [vmem:[#allocation6 + $0x58] sm:$0xff]  ;;  %v838_v30 = vpack.c.bf16 %v452_v26, %v451_v25  ;;  %v453_v31 = vld [vmem:[#allocation8 + $0x40] sm:$0xff]  ;;  %v454_v32 = vld [vmem:[#allocation8 + $0x48] sm:$0xff]  ;;  %s1034_s14 = scalar_lea.vmem %s1033_s17, 256  ;;  %p1035_p3 = scmp.lt.s32.totalorder %s1403_s18, %s1033_s17 }
  0x75   : > { %809 = vmatpush3.bf16.msra.mxu0 %v808_v7  ;;  %v820_v33 = vpack.c.bf16 %v361_v29, %v360_v28  ;;  %v362_v34 = vld [vmem:[#allocation6 + $0x60] sm:$0xff]  ;;  %v363_v35 = vld [vmem:[#allocation6 + $0x68] sm:$0xff]  ;;  %v841_v36 = vpack.c.bf16 %v454_v32, %v453_v31  ;;  %v455_v37 = vld [vmem:[#allocation8 + $0x50] sm:$0xff]  ;;  %p1031_p10 = pneg %p1030_p1  ;;  %p1036_p5 = scmp.lt.s32.totalorder %s1034_s14, %s1028_s13 }
  0x76   : > { %810 = vmatprep.subr.bf16.mxu0 %v1121_v0  ;;  %v456_v38 = vld [vmem:[#allocation8 + $0x58] sm:$0xff]  ;;  %v823_v39 = vpack.c.bf16 %v363_v35, %v362_v34  ;;  %v364_v40 = vld [vmem:[#allocation6 + $0x70] sm:$0xff]  ;;  %v457_v43 = vld [vmem:[#allocation8 + $0x60] sm:$0xff] }
  0x77   : > { %833 = vmatpush3.bf16.msra.mxu1 %v832_v18  ;;  %v365_v41 = vld [vmem:[#allocation6 + $0x78] sm:$0xff]  ;;  %v844_v42 = vpack.c.bf16 %v456_v38, %v455_v37  ;;  %v458_v44 = vld [vmem:[#allocation8 + $0x68] sm:$0xff]  ;;  %v459_v48 = vld [vmem:[#allocation8 + $0x70] sm:$0xff]  ;;  %p1037_p9 = por %p1036_p5, %p1035_p3 }
  0x78   : > { %834 = vmatprep.subr.bf16.mxu1 %v1121_v0  ;;  %v826_v45 = vpack.c.bf16 %v365_v41, %v364_v40  ;;  %v847_v46 = vpack.c.bf16 %v458_v44, %v457_v43  ;;  %v349_v47 = vld [vmem:[%s1356_s8] sm:$0xff] }
  0x79   : > { %812 = vmatpush3.bf16.msra.mxu0 %v811_v14  ;;  %v460_v49 = vld [vmem:[#allocation8 + $0x78] sm:$0xff]  ;;  %v693_v51 = vld [vmem:[%s1452_s2] ss:$0 sm:$0xff]  ;;  %p1038_p11 = pnand %p1037_p9, %p1031_p10 }
  0x7a   : > { %813 = vmatprep.subr.bf16.mxu0 %v1121_v0  ;;  %v850_v50 = vpack.c.bf16 %v460_v49, %v459_v48  ;;  %v692_v56 = vld [vmem:[%s1454_s4] ss:$0 sm:$0xff] }
  0x7b   : > { %836 = vmatpush3.bf16.msra.mxu1 %v835_v24  ;;  %v347_v57 = vadd.f32 %v692_v56, %v349_v47  ;;  %v694_v8 = vld [vmem:[%s1455_s5] ss:$0 sm:$0xff] }
  0x7c   : > { %837 = vmatprep.subr.bf16.mxu1 %v1121_v0  ;;  %v695_v10 = vld [vmem:[%s1456_s6] ss:$0 sm:$0xff] }
  0x7d   : > { %815 = vmatpush3.bf16.msra.mxu0 %v814_v21 }
  0x7e   : > { %816 = vmatprep.subr.bf16.mxu0 %v1121_v0 }
  0x7f   : > { %839 = vmatpush3.bf16.msra.mxu1 %v838_v30 }
  0x80   : > { %840 = vmatprep.subr.bf16.mxu1 %v1121_v0 }
  0x81   : > { %818 = vmatpush3.bf16.msra.mxu0 %v817_v27 }
  0x82   : > { %819 = vmatprep.subr.bf16.mxu0 %v1121_v0 }
  0x83   : > { %842 = vmatpush3.bf16.msra.mxu1 %v841_v36 }
  0x84   : > { %843 = vmatprep.subr.bf16.mxu1 %v1121_v0 }
  0x85   : > { %821 = vmatpush3.bf16.msra.mxu0 %v820_v33 }
  0x86   : > { %822 = vmatprep.subr.bf16.mxu0 %v1121_v0 }
  0x87   : > { %845 = vmatpush3.bf16.msra.mxu1 %v844_v42 }
  0x88   : > { %846 = vmatprep.subr.bf16.mxu1 %v1121_v0 }
  0x89   : > { %824 = vmatpush3.bf16.msra.mxu0 %v823_v39 }
  0x8a   : > { %825 = vmatprep.subr.bf16.mxu0 %v1121_v0 }
  0x8b   : > { %848 = vmatpush3.bf16.msra.mxu1 %v847_v46 }
  0x8c   : > { %849 = vmatprep.subr.bf16.mxu1 %v1121_v0 }
  0x8d   : > { %827 = vmatpush3.bf16.msra.mxu0 %v826_v45 }
  0x8f   : > { %851 = vmatpush3.bf16.msra.mxu1 %v850_v50 }
  0x90   : > { %767 = vmatmul.mubr.f32.vlgmr.msra.gmra.mrb[0].mxu0 %v349_v47 }
 0x163   : > { %v439_v52 = vpop.f32.mrb[0].mxu0 }
 0x164   : > { %v440_v53 = vadd.f32 %v693_v51, %v439_v52  ;;  %v768_v54 = vpop.f32.mrb[1].mxu0 }
 0x166   : > { %v443_v55 = vmax.f32 %v440_v53, 0.0 }
 0x168   : > { %802 = vmatmul.mubr.f32.vlgmr.msra.gmra.mrb[0].mxu1 %v443_v55 }
 0x23b   : > { %v527_v58 = vpop.f32.mrb[0].mxu1 }
 0x23c   : > { %v531_v59 = vadd.f32 %v527_v58, %v347_v57  ;;  %v803_v60 = vpop.f32.mrb[1].mxu1 }
 0x23e   : > { %537 = vadd.xlane.f32.xlu0 %v531_v59 }
 0x2cb   : > { %v538_v61 = vpop.xlane.xlu0 %537 }
 0x2cc   : > { %v539_v62 = vmul.f32 0.03125, %v538_v61 }
 0x2ce   : > { %v540_v63 = vsub.f32 %v531_v59, %v539_v62  ;;  %v544_v1 = vmul.f32 %v539_v62, %v539_v62 }
 0x2d0   : > { %v541_v0 = vmul.f32 %v540_v63, %v540_v63  ;;  %v545_v2 = vmul.f32 96.0, %v544_v1 }
 0x2d2   : > { %542 = vadd.xlane.f32.xlu0 %v541_v0 }
 0x35f   : > { %v543_v3 = vpop.xlane.xlu0 %542 }
 0x360   : > { %v546_v4 = vsub.f32 %v543_v3, %v545_v2 }
 0x362   : > { %v547_v5 = vmul.f32 0.03125, %v546_v4 }
 0x364   : > { %v548_v6 = vadd.f32 1e-05, %v547_v5 }
 0x366   : > { %940 = vrsqrt.f32 %v548_v6 }
 0x370   : > { %v941_v7 = vpop.eup %940 }
 0x371   : > { %v550_v9 = vmul.f32 %v941_v7, %v540_v63 }
 0x373   : > { %v558_v11 = vmul.f32 %v694_v8, %v550_v9 }
 0x375   : > { %v566_v12 = vadd.f32 %v695_v10, %v558_v11 }
 0x377   : > { %567 = vst [vmem:[%s334_s22] sm:$0xff] %v566_v12 }
 0x378   : > { %1041 = shalt.err (!%p1038_p11)
}
 0x379   : > { %s1042_s21 = scalar_lea.hbm %s1401_s9, 128  ;;  %s1046_s12 = scalar_lea.hbm %s1457_s7, 256 }
 0x37a   : > { %p1043_p0 = scmp.ne.s32.totalorder %s1401_s9, %s1042_s21  ;;  %p1047_p6 = scmp.lt.u32.totalorder %s1401_s9, %s1457_s7 }
 0x37b   : > { %p1048_p7 = scmp.lt.u32.totalorder %s1046_s12, %s1042_s21  ;;  %p1050_p8 = scmp.lt.u32.totalorder %s1042_s21, %s1401_s9 }
 0x37c   : > { %p1044_p4 = pnand %p1043_p0, %p1476_p12 }
 0x37d   : > { %p1049_p2 = por %p1048_p7, %p1047_p6 }
 0x37e   : > { %p1045_p13 = pneg %p1044_p4 }
 0x37f   : > { %p1051_p1 = por %p1050_p8, %p1049_p2 }
 0x381   : > { %p1052_p10 = pnand %p1051_p1, %p1045_p13 }
 0x383   : > { %1055 = shalt.err (!%p1052_p10)
}
 0x384   : > { %862 = dma.vmem_to_hbm [thread:$0]  (%p1476_p12), %s1403_s18, 128, %s1401_s9, %s569_s11  }
 0x385 PF: > { %s1477_s22 = sld [smem:[#allocation13_spill]]  ;;  %s1478_s30 = sld [smem:[#allocation14_spill]] }
 0x386   : > { %p1480_p5 = scmp.ge.s32.totalorder %s1114_s29, 2 }
 0x38b   : > { %s594_s8 = sand.u32 1, %s1477_s22   ;;  %p1479_p3 = scmp.ne.s32.totalorder %s1478_s30, 0 }
 0x38c   : > { %s595_s13 = scalar_lea.sflag [#allocation5], %s594_s8 }
 0x38d   : > { %p876_p9 = pnand %p1480_p5, %p1479_p3 }
 0x38f   : > { %1089 = dma.done.wait (!%p876_p9), %s595_s13, 128  }
 0x390   : > { %1091 = vsyncadd (!%p876_p9), %s595_s13, 4294967168  ;;  %s24_s29 = sadd.s32 1, %s1114_s29   ;;  %s1481_s24 = smov %s1098_s25 }
 0x391   : > { %p21_p11 = scmp.ge.s32.totalorder %s24_s29, 4   ;;  %s1482_s25 = smov %s1102_s26 }
 0x392   : > { %s1483_s26 = smov %s1307_s19  ;;  %s1484_s27 = smov %s1110_s28 }
 0x393   : > { %s1485_s28 = smov %s1487_s20  ;;  %23 = sbr.rel (!%p21_p11) target bundleno = 7 (0x7), region = 109 }
 0x39a   :  { %600 = vsyncpa [#allocation4], 1 }
 0x39b   :  { %602 = vsyncpa [#allocation4 + $0x1], 1 }
 0x39c   :  { %603 = vsyncpa [#allocation7], 1 }
 0x39d   :  { %604 = vsyncpa [#allocation5], 1 }
 0x39e   :  { %606 = vsyncpa [#allocation5 + $0x1], 1 }

</bundles_post_ra>
